<compile_context>
chip_gen: v7x
topology: tpu7x:2x2x1
jax: 0.10.0
libtpu: 0.0.40
codegen_flags: <defaults>
</compile_context>

<pallas_src>
import functools

import jax
import jax.numpy as jnp
import numpy as np
from jax import lax
from jax.experimental import pallas as pl
from jax.experimental.pallas import tpu as pltpu


# Tile targets tuned for v5e/v6e (128 MiB VMEM).
# TODO(synk): halve these on v7x (64 MiB VMEM per TensorCore) and set
# vmem_limit_bytes explicitly once generation detection is wired in.
_LIN_TM, _LIN_TN, _LIN_TK = 256, 256, 512
_ATT_TQ, _ATT_TK = 256, 256


def _tile(dim, target):
    """Largest convenient tile: `target` if it divides `dim`, else the full dim."""
    if dim <= target:
        return dim
    if dim % target == 0:
        return target
    return dim  # TODO(synk): pick a near-target divisor for ragged dims.


# ----------------------------------------------------------------------------
# Tiled linear (GEMM + bias) kernel
# ----------------------------------------------------------------------------
def _linear_kernel(x_ref, w_ref, b_ref, o_ref, acc_ref):
    kk = pl.program_id(2)

    @pl.when(kk == 0)
    def _init():
        acc_ref[...] = jnp.zeros(acc_ref.shape, dtype=acc_ref.dtype)

    # bf16 operands -> full-rate MXU (bf16-native on v5e/v6e/v7x); f32 accumulate.
    acc_ref[...] += jnp.dot(
        x_ref[...].astype(jnp.bfloat16),
        w_ref[...].astype(jnp.bfloat16),
        preferred_element_type=jnp.float32,
    )

    @pl.when(kk == pl.num_programs(2) - 1)
    def _finalize():
        o_ref[...] = (acc_ref[...] + b_ref[...]).astype(o_ref.dtype)


def linear(x2d, w, b):
    """Tiled GEMM + bias: (M, K) @ (K, O) + (O,) -> (M, O) in float32."""
    M, K = x2d.shape
    O = w.shape[1]
    tm, tn, tk = _tile(M, _LIN_TM), _tile(O, _LIN_TN), _tile(K, _LIN_TK)
    grid = (M // tm, O // tn, K // tk)
    return pl.pallas_call(
        _linear_kernel,
        out_shape=jax.ShapeDtypeStruct((M, O), jnp.float32),
        grid=grid,
        in_specs=[
            pl.BlockSpec((tm, tk), lambda i, j, k: (i, k)),
            pl.BlockSpec((tk, tn), lambda i, j, k: (k, j)),
            pl.BlockSpec((1, tn), lambda i, j, k: (0, j)),
        ],
        out_specs=pl.BlockSpec((tm, tn), lambda i, j, k: (i, j)),
        scratch_shapes=[pltpu.VMEM((tm, tn), jnp.float32)],
        compiler_params=pltpu.CompilerParams(
            dimension_semantics=("parallel", "parallel", "arbitrary")
        ),
    )(x2d, w, b.reshape(1, O))


# ----------------------------------------------------------------------------
# RoPE helpers (lane-dense, head-packed)
# ----------------------------------------------------------------------------
def _shift_lanes(t, s):
    """out[:, c] = t[:, (c + s) % C]: cyclic lane shift via static slices.

    Lowers to the same XLU lane rotation pltpu.roll would emit, but with an
    unambiguous shift direction."""
    return jnp.concatenate([t[:, s:], t[:, :s]], axis=1)


def _rope_packed(t, cos, sin_neg, sin_pos, shift):
    """RoPE2D on a head-packed (rows, C) slab.

    Equivalent to per-head `t * cos + rotate_half(t) * sin`, where rotate_half
    acts independently inside every (head_dim // 2)-wide chunk.  sin_neg /
    sin_pos are the sin table pre-negated / zero-masked per half-chunk so the
    cyclic lane shifts never leak across chunk (or head) boundaries.  All ops
    are full-width VPU / XLU work on (rows, C) vregs."""
    c = t.shape[1]
    return (t * cos
            + _shift_lanes(t, shift) * sin_neg
            + _shift_lanes(t, c - shift) * sin_pos)


def _rope2d_cos_sin(xpos, head_dim, base=100.0):
    """Per-token cos/sin of shape (B, N, head_dim), layout [y-half | x-half]."""
    D = head_dim // 2
    inv_freq = 1.0 / (base ** (jnp.arange(0, D, 2, dtype=jnp.float32) / D))  # (D//2,)

    def one_axis(p):  # p: (B, N) integer positions along one spatial axis
        f = p.astype(jnp.float32)[..., None] * inv_freq       # (B, N, D//2)
        f = jnp.concatenate([f, f], axis=-1)                   # (B, N, D)
        return jnp.cos(f), jnp.sin(f)

    cy, sy = one_axis(xpos[..., 0])   # y positions -> first half of head_dim
    cx, sx = one_axis(xpos[..., 1])   # x positions -> second half
    cos = jnp.concatenate([cy, cx], axis=-1)
    sin = jnp.concatenate([sy, sx], axis=-1)
    return cos, sin


def rope2d_tables(xpos, head_dim, num_heads, base=100.0):
    """Head-packed (B, N, C) RoPE tables for the lane-dense kernel.

    Returns (cos, sin_neg, sin_pos) where sin_neg pairs with a left lane shift
    of head_dim//4 and sin_pos with a right lane shift of head_dim//4, so that
    `t*cos + shiftL(t)*sin_neg + shiftR(t)*sin_pos` equals per-head RoPE2D."""
    cos_h, sin_h = _rope2d_cos_sin(xpos, head_dim, base)       # (B, N, hd)
    cos = jnp.tile(cos_h, (1, 1, num_heads))                   # (B, N, C)
    sin = jnp.tile(sin_h, (1, 1, num_heads))
    D = head_dim // 2
    first_half = jnp.asarray((np.arange(num_heads * head_dim) % D) < (D // 2))
    sin_neg = jnp.where(first_half, -sin, 0.0)
    sin_pos = jnp.where(first_half, 0.0, sin)
    return cos, sin_neg, sin_pos


# ----------------------------------------------------------------------------
# Flash attention kernel: grid = (batch, q-tiles, kv-tiles)
# ----------------------------------------------------------------------------
def _flash_attn_kernel(num_heads, head_dim, scale,
                       q_ref, k_ref, v_ref,
                       cos_q_ref, sn_q_ref, sp_q_ref,
                       cos_k_ref, sn_k_ref, sp_k_ref,
                       o_ref,
                       qrot_ref, acc_ref, m_ref, l_ref):
    ki = pl.program_id(2)
    shift = head_dim // 4   # rotate-half shift inside each head_dim//2 chunk

    @pl.when(ki == 0)
    def _init():
        # RoPE + softmax scale on the full-lane (tq, C) q slab, once per
        # (batch, q-tile); kept resident in VMEM scratch across all kv steps.
        q_rot = _rope_packed(q_ref[0], cos_q_ref[0], sn_q_ref[0], sp_q_ref[0],
                             shift)
        qrot_ref[...] = (q_rot * scale).astype(qrot_ref.dtype)
        m_ref[...] = jnp.full(m_ref.shape, -jnp.inf, dtype=m_ref.dtype)
        l_ref[...] = jnp.zeros(l_ref.shape, dtype=l_ref.dtype)
        acc_ref[...] = jnp.zeros(acc_ref.shape, dtype=acc_ref.dtype)

    # RoPE the current kv tile (full-width VPU work), then go bf16 for the MXU.
    k_rot = _rope_packed(k_ref[0], cos_k_ref[0], sn_k_ref[0], sp_k_ref[0],
                         shift).astype(qrot_ref.dtype)
    v = v_ref[0].astype(qrot_ref.dtype)
    q_rot = qrot_ref[...]

    # Online softmax; only the two MXU contractions are per-head, the softmax
    # arithmetic stays on lane-dense (tq, tk) tiles.
    for h in range(num_heads):
        hsl = slice(h * head_dim, (h + 1) * head_dim)
        # scores: contract last dims of q and k -- k.T is never materialized.
        s = lax.dot_general(q_rot[:, hsl], k_rot[:, hsl],
                            (((1,), (1,)), ((), ())),
                            preferred_element_type=jnp.float32)      # (tq, tk)
        m_prev = m_ref[:, h:h + 1]                                   # (tq, 1)
        m_new = jnp.maximum(m_prev, jnp.max(s, axis=-1, keepdims=True))
        alpha = jnp.exp(m_prev - m_new)
        p = jnp.exp(s - m_new)
        l_ref[:, h:h + 1] = alpha * l_ref[:, h:h + 1] + jnp.sum(
            p, axis=-1, keepdims=True)
        pv = lax.dot_general(p.astype(v.dtype), v[:, hsl],
                             (((1,), (0,)), ((), ())),
                             preferred_element_type=jnp.float32)      # (tq, hd)
        acc_ref[:, hsl] = alpha * acc_ref[:, hsl] + pv
        m_ref[:, h:h + 1] = m_new

    @pl.when(ki == pl.num_programs(2) - 1)
    def _finalize():
        # Per-head normalization via approx reciprocal (EUP slot), then a single
        # lane-dense (tq, C) store.
        inv_l = pl.reciprocal(l_ref[...], approx=True)                # (tq, H)
        cols = [acc_ref[:, h * head_dim:(h + 1) * head_dim] * inv_l[:, h:h + 1]
                for h in range(num_heads)]
        o_ref[0] = jnp.concatenate(cols, axis=1).astype(o_ref.dtype)


def flash_attention(qkv, cos, sin_neg, sin_pos, num_heads, scale,
                    tq=None, tk=None, compute_dtype=jnp.bfloat16):
    """qkv: (B, N, 3C) head-major; cos/sin tables: (B, N, C). Returns (B, N, C)."""
    B, N, C3 = qkv.shape
    C = C3 // 3
    head_dim = C // num_heads
    assert head_dim % 4 == 0, "RoPE2D needs head_dim % 4 == 0"

    tq = _tile(N, _ATT_TQ) if tq is None else tq
    tk = _tile(N, _ATT_TK) if tk is None else tk
    assert N % tq == 0 and N % tk == 0

    if C % 128 == 0:
        # Slice q/k/v out of the packed qkv purely via BlockSpec column indices:
        # exact (tile, C) DMAs, no wrapper-side copies.
        q_arr = k_arr = v_arr = qkv
        q_col, k_col, v_col = 0, 1, 2
    else:
        # Fallback for lane-unaligned C: one cheap slice per operand.
        q_arr, k_arr, v_arr = qkv[..., :C], qkv[..., C:2 * C], qkv[..., 2 * C:]
        q_col = k_col = v_col = 0

    q_spec = pl.BlockSpec((1, tq, C), lambda b, qi, ki: (b, qi, q_col))
    k_spec = pl.BlockSpec((1, tk, C), lambda b, qi, ki: (b, ki, k_col))
    v_spec = pl.BlockSpec((1, tk, C), lambda b, qi, ki: (b, ki, v_col))
    rq_spec = pl.BlockSpec((1, tq, C), lambda b, qi, ki: (b, qi, 0))
    rk_spec = pl.BlockSpec((1, tk, C), lambda b, qi, ki: (b, ki, 0))
    out_spec = pl.BlockSpec((1, tq, C), lambda b, qi, ki: (b, qi, 0))

    kern = functools.partial(_flash_attn_kernel, num_heads, head_dim, scale)
    return pl.pallas_call(
        kern,
        out_shape=jax.ShapeDtypeStruct((B, N, C), jnp.float32),
        grid=(B, N // tq, N // tk),
        in_specs=[q_spec, k_spec, v_spec,
                  rq_spec, rq_spec, rq_spec,
                  rk_spec, rk_spec, rk_spec],
        out_specs=out_spec,
        scratch_shapes=[
            pltpu.VMEM((tq, C), compute_dtype),        # RoPE'd + pre-scaled q
            pltpu.VMEM((tq, C), jnp.float32),          # output accumulator
            pltpu.VMEM((tq, num_heads), jnp.float32),  # running max per head
            pltpu.VMEM((tq, num_heads), jnp.float32),  # running denom per head
        ],
        compiler_params=pltpu.CompilerParams(
            dimension_semantics=("parallel", "parallel", "arbitrary")
        ),
    )(q_arr, k_arr, v_arr, cos, sin_neg, sin_pos, cos, sin_neg, sin_pos)


# ----------------------------------------------------------------------------
# Full forward (matches the PyTorch module semantics)
# ----------------------------------------------------------------------------
def attention_forward(params, x, xpos, num_heads, tq=None, tk=None):
    B, N, C = x.shape
    head_dim = C // num_heads
    scale = head_dim ** (-0.5)

    # qkv projection (qkv_bias=False -> zero bias, identical math).
    # Output stays (B, N, 3C) head-major: no 5-D reshapes/transposes in HBM.
    qkv = linear(x.reshape(B * N, C), params["w_qkv"], params["b_qkv"])
    qkv = qkv.reshape(B, N, 3 * C)

    cos, sin_neg, sin_pos = rope2d_tables(xpos, head_dim, num_heads)
    o = flash_attention(qkv, cos, sin_neg, sin_pos, num_heads, scale,
                        tq=tq, tk=tk)                   # (B, N, C)

    out = linear(o.reshape(B * N, C), params["w_proj"], params["b_proj"])
    # attn_drop / proj_drop are identity (p=0.0).
    return out.reshape(B, N, C)


# ----------------------------------------------------------------------------
# Pure-JAX reference (mirrors the PyTorch forward) for a correctness check
# ----------------------------------------------------------------------------
def reference_forward(params, x, xpos, num_heads):
    B, N, C = x.shape
    hd = C // num_heads
    scale = hd ** (-0.5)
    qkv = x @ params["w_qkv"] + params["b_qkv"]
    qkv = qkv.reshape(B, N, 3, num_heads, hd).transpose(0, 3, 2, 1, 4)
    q, k, v = qkv[:, :, 0], qkv[:, :, 1], qkv[:, :, 2]
    cos, sin = _rope2d_cos_sin(xpos, hd)
    D = hd // 2

    def rot(u):
        a, b = u[..., : D // 2], u[..., D // 2:]
        return jnp.concatenate([-b, a], axis=-1)

    def rope(t):
        t1, t2 = t[..., :D], t[..., D:]
        c1, c2 = cos[..., :D][:, None], cos[..., D:][:, None]
        s1, s2 = sin[..., :D][:, None], sin[..., D:][:, None]
        return jnp.concatenate(
            [t1 * c1 + rot(t1) * s1, t2 * c2 + rot(t2) * s2], axis=-1
        )

    q, k = rope(q), rope(k)
    attn = jnp.einsum("bhnd,bhmd->bhnm", q, k) * scale
    attn = jax.nn.softmax(attn, axis=-1)
    o = jnp.einsum("bhnm,bhmd->bhnd", attn, v)
    o = o.transpose(0, 2, 1, 3).reshape(B, N, C)
    return o @ params["w_proj"] + params["b_proj"]


if __name__ == "__main__":
    # Small but lane-friendly shapes: dim=128, num_heads=4 -> head_dim=32
    # (head_dim % 4 == 0 as required by RoPE2D; C=128 keeps blocks lane-dense).
    B, N, C, H = 2, 16, 128, 4

    key = jax.random.PRNGKey(0)
    kx, kqkv, kproj, kbias = jax.random.split(key, 4)

    x = jax.random.normal(kx, (B, N, C), dtype=jnp.float32)

    # xpos: 4x4 patch grid of (y, x) integer positions, shared across the batch.
    grid_side = 4
    ys = jnp.arange(N, dtype=jnp.int32) // grid_side
    xs = jnp.arange(N, dtype=jnp.int32) % grid_side
    xpos = jnp.broadcast_to(jnp.stack([ys, xs], axis=-1), (B, N, 2))

    params = {
        "w_qkv": 0.05 * jax.random.normal(kqkv, (C, 3 * C), dtype=jnp.float32),
        "b_qkv": jnp.zeros((3 * C,), dtype=jnp.float32),  # qkv_bias=False
        "w_proj": 0.05 * jax.random.normal(kproj, (C, C), dtype=jnp.float32),
        "b_proj": 0.05 * jax.random.normal(kbias, (C,), dtype=jnp.float32),
    }

    # tq=tk=8 so the toy run exercises multi-tile online softmax (grid (2,2,2)).
    out = attention_forward(params, x, xpos, H, tq=8, tk=8)
    out = jax.block_until_ready(out)

    ref = jax.block_until_ready(reference_forward(params, x, xpos, H))
    # bf16 MXU operands with f32 accumulation -> tolerance relaxed vs pure f32.
    if not np.allclose(np.asarray(out), np.asarray(ref), rtol=3e-2, atol=3e-2):
        err = float(np.max(np.abs(np.asarray(out) - np.asarray(ref))))
        raise AssertionError(
            f"Pallas kernel output does not match reference (max abs err {err})"
        )

    print("KERNEL_OK")
</pallas_src>

<mosaic_0001>
module attributes {stable_mosaic.version = 11 : i64} {
  func.func @_linear_kernel(%arg0: i32, %arg1: i32, %arg2: i32, %arg3: memref<32x128xf32, #tpu.memory_space<vmem>>, %arg4: memref<128x384xf32, #tpu.memory_space<vmem>>, %arg5: memref<1x384xf32, #tpu.memory_space<vmem>>, %arg6: memref<32x384xf32, #tpu.memory_space<vmem>>, %arg7: memref<32x384xf32, #tpu.memory_space<vmem>>) attributes {dimension_semantics = [#tpu.dimension_semantics<parallel>, #tpu.dimension_semantics<parallel>, #tpu.dimension_semantics<arbitrary>], iteration_bounds = array<i64: 1, 1, 1>, scalar_prefetch = 0 : i64, scratch_operands = 1 : i64, tpu.core_type = #tpu.core_type<tc>, window_params = [{transform_indices = @transform_0, window_bounds = array<i64: 32, 128>}, {transform_indices = @transform_1, window_bounds = array<i64: 128, 384>}, {transform_indices = @transform_2, window_bounds = array<i64: 1, 384>}, {transform_indices = @transform_3, window_bounds = array<i64: 32, 384>}]} {
    %c0_i32 = arith.constant 0 : i32
    %0 = arith.cmpi eq, %arg2, %c0_i32 : i32
    %1 = arith.extui %0 : i1 to i32
    %c0_i32_0 = arith.constant 0 : i32
    %2 = arith.cmpi ne, %1, %c0_i32_0 : i32
    scf.if %2 {
      %cst_10 = arith.constant 0.000000e+00 : f32
      %14 = vector.broadcast %cst_10 : f32 to vector<32x384xf32>
      %c0_11 = arith.constant 0 : index
      %c0_12 = arith.constant 0 : index
      %15 = vector.load %arg7[%c0_11, %c0_12] : memref<32x384xf32, #tpu.memory_space<vmem>>, vector<32x384xf32>
      tpu.vector_store %arg7[%c0_11, %c0_12], %14 {strides = array<i32>} : memref<32x384xf32, #tpu.memory_space<vmem>>, vector<32x384xf32>,
    } else {
    }
    %c0 = arith.constant 0 : index
    %c0_1 = arith.constant 0 : index
    %3 = vector.load %arg7[%c0, %c0_1] : memref<32x384xf32, #tpu.memory_space<vmem>>, vector<32x384xf32>
    %c0_2 = arith.constant 0 : index
    %c0_3 = arith.constant 0 : index
    %4 = vector.load %arg3[%c0_2, %c0_3] : memref<32x128xf32, #tpu.memory_space<vmem>>, vector<32x128xf32>
    %5 = arith.truncf %4 : vector<32x128xf32> to vector<32x128xbf16>
    %c0_4 = arith.constant 0 : index
    %c0_5 = arith.constant 0 : index
    %6 = vector.load %arg4[%c0_4, %c0_5] : memref<128x384xf32, #tpu.memory_space<vmem>>, vector<128x384xf32>
    %7 = arith.truncf %6 : vector<128x384xf32> to vector<128x384xbf16>
    %cst = arith.constant dense<0.000000e+00> : vector<32x384xf32>
    %8 = tpu.matmul %5, %7, %cst {dimension_numbers = #tpu.dot_dimension_numbers<[1], [0], [0], [1], [0, 0, 1, 1], [], []>} : vector<32x128xbf16>, vector<128x384xbf16>, vector<32x384xf32> -> vector<32x384xf32>
    %9 = arith.addf %3, %8 : vector<32x384xf32>
    %c0_6 = arith.constant 0 : index
    %c0_7 = arith.constant 0 : index
    %10 = vector.load %arg7[%c0_6, %c0_7] : memref<32x384xf32, #tpu.memory_space<vmem>>, vector<32x384xf32>
    tpu.vector_store %arg7[%c0_6, %c0_7], %9 {strides = array<i32>} : memref<32x384xf32, #tpu.memory_space<vmem>>, vector<32x384xf32>,
    %c0_i32_8 = arith.constant 0 : i32
    %11 = arith.cmpi eq, %arg2, %c0_i32_8 : i32
    %12 = arith.extui %11 : i1 to i32
    %c0_i32_9 = arith.constant 0 : i32
    %13 = arith.cmpi ne, %12, %c0_i32_9 : i32
    scf.if %13 {
      %c0_10 = arith.constant 0 : index
      %c0_11 = arith.constant 0 : index
      %14 = vector.load %arg7[%c0_10, %c0_11] : memref<32x384xf32, #tpu.memory_space<vmem>>, vector<32x384xf32>
      %c0_12 = arith.constant 0 : index
      %c0_13 = arith.constant 0 : index
      %15 = vector.load %arg5[%c0_12, %c0_13] : memref<1x384xf32, #tpu.memory_space<vmem>>, vector<1x384xf32>
      %16 = vector.broadcast %15 : vector<1x384xf32> to vector<32x384xf32>
      %17 = arith.addf %14, %16 : vector<32x384xf32>
      %c0_14 = arith.constant 0 : index
      %c0_15 = arith.constant 0 : index
      %18 = vector.load %arg6[%c0_14, %c0_15] : memref<32x384xf32, #tpu.memory_space<vmem>>, vector<32x384xf32>
      tpu.vector_store %arg6[%c0_14, %c0_15], %17 {strides = array<i32>} : memref<32x384xf32, #tpu.memory_space<vmem>>, vector<32x384xf32>,
    } else {
    }
    return
  }
  func.func @transform_0(%arg0: i32, %arg1: i32, %arg2: i32) -> (i32, i32) {
    %c0_i32 = arith.constant 0 : i32
    return %arg0, %arg2 : i32, i32
  }
  func.func @transform_1(%arg0: i32, %arg1: i32, %arg2: i32) -> (i32, i32) {
    %c0_i32 = arith.constant 0 : i32
    return %arg2, %arg1 : i32, i32
  }
  func.func @transform_2(%arg0: i32, %arg1: i32, %arg2: i32) -> (i32, i32) {
    %c0_i32 = arith.constant 0 : i32
    %c0_i32_0 = arith.constant 0 : i32
    return %c0_i32, %arg1 : i32, i32
  }
  func.func @transform_3(%arg0: i32, %arg1: i32, %arg2: i32) -> (i32, i32) {
    %c0_i32 = arith.constant 0 : i32
    return %arg0, %arg1 : i32, i32
  }
}

</mosaic_0001>

<bundles_post_ra>
// kernel: tpu_custom_call.1
= control target key start
LH: loop header
LB: loop body
LE: loop exit
PB: predicated region body
PF: predicated region fallthrough
CT: control target
= control target key end

     0   :  { %8 = vsyncpa [#allocation4], 0  ;;  %s535_s0 = inlined_call_operand.hbm [shape: f32[32,128], index: 0, kind: input, shape index: {}]   ;;  %s536_s1 = inlined_call_operand.hbm [shape: f32[128,384], index: 1, kind: input, shape index: {}]   ;;  %s537_s2 = inlined_call_operand.vmem [shape: f32[1,384], index: 2, kind: input, shape index: {}]   ;;  %s538_s3 = inlined_call_operand.hbm [shape: f32[32,384], index: 3, kind: output, shape index: {}]  }
   0x1   :  { %9 = vsyncpa [#allocation7], 0 }
   0x2   :  { %10 = vsyncpa [#allocation5], 0  ;;  %s460_s12 = smov [#allocation3]   ;;  %s388_s16 = scalar_lea.hbm %s535_s0, 512 }
   0x3   :  { %s16_s13 = sshll.u32 %s460_s12, 4  ;;  %p389_p0 = scmp.ne.s32.totalorder %s535_s0, %s388_s16  ;;  %s17_s13 = int_to_ptr.vmem [resolvable:$true] %s16_s13 }
   0x4   :  { %p392_p1 = scmp.lt.u32.totalorder %s388_s16, %s535_s0 }
   0x6   :  { %p394_p2 = pnand %p392_p1, %p389_p0 }
   0x8   :  { %397 = shalt.err (!%p394_p2)
}
   0x9   :  { %s398_s21 = scalar_lea.vmem %s17_s13, 512  ;;  %p403_p4 = scmp.lt.s32.totalorder %s17_s13, %s17_s13 }
   0xa   :  { %p399_p3 = scmp.ne.s32.totalorder %s17_s13, %s398_s21  ;;  %p404_p5 = scmp.lt.s32.totalorder %s398_s21, %s398_s21 }
   0xc   :  { %p405_p6 = por %p404_p5, %p403_p4 }
   0xe   :  { %p406_p7 = pnand %p405_p6, %p399_p3 }
  0x10   :  { %409 = shalt.err (!%p406_p7)
}
  0x11   :  { %s461_s22 = smov 128   ;;  %s462_s23 = smov 8  }
  0x12   :  { %22 = dma.hbm_to_vmem [thread:$0]  %s535_s0, 512, %s17_s13, [#allocation4], %s461_s22, %s461_s22, %s462_s23  }
  0x13   :  { %s463_s26 = smov [#allocation6]   ;;  %s410_s30 = scalar_lea.hbm %s536_s1, 6144 }
  0x14   :  { %s28_s27 = sshll.u32 %s463_s26, 4  ;;  %p411_p8 = scmp.ne.s32.totalorder %s536_s1, %s410_s30  ;;  %s29_s27 = int_to_ptr.vmem [resolvable:$true] %s28_s27 }
  0x15   :  { %p414_p9 = scmp.lt.u32.totalorder %s410_s30, %s536_s1 }
  0x17   :  { %p416_p10 = pnand %p414_p9, %p411_p8 }
  0x19   :  { %419 = shalt.err (!%p416_p10)
}
  0x1a   :  { %s420_s8 = scalar_lea.vmem %s29_s27, 6144  ;;  %p425_p12 = scmp.lt.s32.totalorder %s29_s27, %s29_s27 }
  0x1b   :  { %p421_p11 = scmp.ne.s32.totalorder %s29_s27, %s420_s8  ;;  %p426_p13 = scmp.lt.s32.totalorder %s420_s8, %s420_s8 }
  0x1d   :  { %p427_p0 = por %p426_p13, %p425_p12 }
  0x1f   :  { %p428_p1 = pnand %p427_p0, %p421_p11 }
  0x21   :  { %431 = shalt.err (!%p428_p1)
}
  0x22   :  { %s464_s0 = smov 384   ;;  %s465_s9 = smov 24  }
  0x23   :  { %34 = dma.hbm_to_vmem [thread:$0]  %s536_s1, 6144, %s29_s27, [#allocation7], %s464_s0, %s464_s0, %s465_s9  }
  0x24   :  { %454 = dma.done.wait [#allocation4], 512  }
  0x25   :  { %455 = vsyncadd [#allocation4], 4294966784 }
  0x26   :  { %456 = dma.done.wait [#allocation7], 6144  }
  0x27   :  { %457 = vsyncadd [#allocation7], 4294961152  ;;  %v466_v0 = vmov 0   ;;  %v79_v1 = vld [vmem:[#allocation6 + $0x8] sm:$0xff]  ;;  %v82_v2 = vld [vmem:[#allocation6 + $0x20] sm:$0xff] }
  0x28   :  { %182 = vmatprep.mubr.bf16.mxu0 %v466_v0  ;;  %v78_v3 = vld [vmem:[#allocation6] sm:$0xff]  ;;  %v127_v4 = vpack.c.bf16 %v82_v2, %v79_v1  ;;  %v81_v5 = vld [vmem:[#allocation6 + $0x18] sm:$0xff]  ;;  %v88_v7 = vld [vmem:[#allocation6 + $0x50] sm:$0xff] }
  0x29   :  { %v85_v6 = vld [vmem:[#allocation6 + $0x38] sm:$0xff]  ;;  %v126_v8 = vpack.c.bf16 %v81_v5, %v78_v3  ;;  %v84_v10 = vld [vmem:[#allocation6 + $0x30] sm:$0xff]  ;;  %v87_v11 = vld [vmem:[#allocation6 + $0x48] sm:$0xff] }
  0x2a   :  { %v130_v9 = vpack.c.bf16 %v88_v7, %v85_v6  ;;  %v80_v12 = vld [vmem:[#allocation6 + $0x10] sm:$0xff]  ;;  %150 = vmatprep.subr.bf16.mxu0 %v127_v4  ;;  %v83_v13 = vld [vmem:[#allocation6 + $0x28] sm:$0xff]  ;;  %v94_v15 = vld [vmem:[#allocation6 + $0x80] sm:$0xff]  ;;  %v129_v16 = vpack.c.bf16 %v87_v11, %v84_v10 }
  0x2b   :  { %v91_v14 = vld [vmem:[#allocation6 + $0x68] sm:$0xff]  ;;  %151 = vmatpush1.bf16.msra.mxu0 %v126_v8  ;;  %v128_v17 = vpack.c.bf16 %v83_v13, %v80_v12  ;;  %v86_v18 = vld [vmem:[#allocation6 + $0x40] sm:$0xff]  ;;  %v93_v21 = vld [vmem:[#allocation6 + $0x78] sm:$0xff] }
  0x2c   :  { %152 = vmatprep.subr.bf16.mxu0 %v130_v9  ;;  %v133_v19 = vpack.c.bf16 %v94_v15, %v91_v14  ;;  %v90_v20 = vld [vmem:[#allocation6 + $0x60] sm:$0xff]  ;;  %v89_v22 = vld [vmem:[#allocation6 + $0x58] sm:$0xff]  ;;  %v100_v25 = vld [vmem:[#allocation6 + $0xb0] sm:$0xff] }
  0x2d   :  { %360 = vmatprep.subr.bf16.mxu1 %v128_v17  ;;  %v131_v23 = vpack.c.bf16 %v89_v22, %v86_v18  ;;  %v97_v24 = vld [vmem:[#allocation6 + $0x98] sm:$0xff]  ;;  %v92_v26 = vld [vmem:[#allocation6 + $0x70] sm:$0xff]  ;;  %v95_v27 = vld [vmem:[#allocation6 + $0x88] sm:$0xff]  ;;  %v132_v28 = vpack.c.bf16 %v93_v21, %v90_v20 }
  0x2e   :  { %361 = vmatpush3.bf16.msra.mxu1 %v128_v17  ;;  %v96_v29 = vld [vmem:[#allocation6 + $0x90] sm:$0xff]  ;;  %v134_v30 = vpack.c.bf16 %v95_v27, %v92_v26  ;;  %v136_v31 = vpack.c.bf16 %v100_v25, %v97_v24  ;;  %v99_v32 = vld [vmem:[#allocation6 + $0xa8] sm:$0xff]  ;;  %v98_v33 = vld [vmem:[#allocation6 + $0xa0] sm:$0xff] }
  0x2f   :  { %153 = vmatpush1.bf16.msra.mxu0 %v129_v16  ;;  %362 = vmatprep.subr.bf16.mxu1 %v131_v23  ;;  %v101_v34 = vld [vmem:[#allocation6 + $0xb8] sm:$0xff]  ;;  %v103_v35 = vld [vmem:[#allocation6 + $0xc8] sm:$0xff]  ;;  %v106_v36 = vld [vmem:[#allocation6 + $0xe0] sm:$0xff]  ;;  %v135_v37 = vpack.c.bf16 %v99_v32, %v96_v29  ;;  %v293_v16 = vlaneseq }
  0x30   :  { %154 = vmatprep.subr.bf16.mxu0 %v133_v19  ;;  %v102_v38 = vld [vmem:[#allocation6 + $0xc0] sm:$0xff]  ;;  %v137_v39 = vpack.c.bf16 %v101_v34, %v98_v33  ;;  %v139_v40 = vpack.c.bf16 %v106_v36, %v103_v35  ;;  %v105_v41 = vld [vmem:[#allocation6 + $0xd8] sm:$0xff]  ;;  %v104_v42 = vld [vmem:[#allocation6 + $0xd0] sm:$0xff] }
  0x31   :  { %v107_v43 = vld [vmem:[#allocation6 + $0xe8] sm:$0xff]  ;;  %v109_v44 = vld [vmem:[#allocation6 + $0xf8] sm:$0xff]  ;;  %v112_v45 = vld [vmem:[#allocation6 + $0x110] sm:$0xff]  ;;  %v138_v48 = vpack.c.bf16 %v105_v41, %v102_v38  ;;  %v294_v17 = vshrl.u32 %v293_v16, 7 }
  0x32   :  { %363 = vmatpush3.bf16.msra.mxu1 %v131_v23  ;;  %v72_v46 = vld [vmem:[#allocation3] sm:$0xff]  ;;  %v73_v47 = vld [vmem:[#allocation3 + $0x8] sm:$0xff]  ;;  %v108_v49 = vld [vmem:[#allocation6 + $0xf0] sm:$0xff]  ;;  %v140_v50 = vpack.c.bf16 %v107_v43, %v104_v42  ;;  %v142_v52 = vpack.c.bf16 %v112_v45, %v109_v44 }
  0x33   :  { %155 = vmatpush1.bf16.msra.mxu0 %v132_v28  ;;  %364 = vmatprep.subr.bf16.mxu1 %v134_v30  ;;  %v76_v51 = vpack.c.bf16 %v73_v47, %v72_v46  ;;  %v111_v53 = vld [vmem:[#allocation6 + $0x108] sm:$0xff]  ;;  %v110_v54 = vld [vmem:[#allocation6 + $0x100] sm:$0xff]  ;;  %v113_v55 = vld [vmem:[#allocation6 + $0x118] sm:$0xff]  ;;  %v295_v18 = vsub.s32 0, %v294_v17  ;;  %v299_v20 = vsub.s32 1, %v294_v17  ;;  %v303_v21 = vsub.s32 2, %v294_v17 }
  0x34   :  { %156 = vmatprep.subr.bf16.mxu0 %v136_v31  ;;  %v115_v56 = vld [vmem:[#allocation6 + $0x128] sm:$0xff]  ;;  %v118_v57 = vld [vmem:[#allocation6 + $0x140] sm:$0xff]  ;;  %v141_v58 = vpack.c.bf16 %v111_v53, %v108_v49  ;;  %v143_v60 = vpack.c.bf16 %v113_v55, %v110_v54  ;;  %v117_v62 = vld [vmem:[#allocation6 + $0x138] sm:$0xff] }
  0x35   :  { %376 = vmatprep.mubr.bf16.mxu1 %v76_v51  ;;  %v114_v59 = vld [vmem:[#allocation6 + $0x120] sm:$0xff]  ;;  %v145_v61 = vpack.c.bf16 %v118_v57, %v115_v56  ;;  %v116_v63 = vld [vmem:[#allocation6 + $0x130] sm:$0xff]  ;;  %v119_v1 = vld [vmem:[#allocation6 + $0x148] sm:$0xff] }
  0x36   :  { %365 = vmatpush3.bf16.msra.mxu1 %v134_v30  ;;  %v121_v2 = vld [vmem:[#allocation6 + $0x158] sm:$0xff]  ;;  %v124_v3 = vld [vmem:[#allocation6 + $0x170] sm:$0xff]  ;;  %v144_v4 = vpack.c.bf16 %v117_v62, %v114_v59  ;;  %v146_v6 = vpack.c.bf16 %v119_v1, %v116_v63  ;;  %v123_v8 = vld [vmem:[#allocation6 + $0x168] sm:$0xff] }
  0x37   :  { %157 = vmatpush1.bf16.msra.mxu0 %v135_v37  ;;  %366 = vmatprep.subr.bf16.mxu1 %v137_v39  ;;  %v120_v5 = vld [vmem:[#allocation6 + $0x150] sm:$0xff]  ;;  %v148_v7 = vpack.c.bf16 %v124_v3, %v121_v2  ;;  %v122_v9 = vld [vmem:[#allocation6 + $0x160] sm:$0xff]  ;;  %v125_v10 = vld [vmem:[#allocation6 + $0x178] sm:$0xff] }
  0x38   :  { %158 = vmatprep.subr.bf16.mxu0 %v139_v40  ;;  %v147_v11 = vpack.c.bf16 %v123_v8, %v120_v5  ;;  %v149_v12 = vpack.c.bf16 %v125_v10, %v122_v9  ;;  %v74_v13 = vld [vmem:[#allocation3 + $0x10] sm:$0xff]  ;;  %v75_v14 = vld [vmem:[#allocation3 + $0x18] sm:$0xff]  ;;  %v291_v19 = vld [vmem:[%s537_s2] sm:$0x7]  ;;  %s467_s2 = smov [#allocation8]  }
  0x39   :  { %v77_v15 = vpack.c.bf16 %v75_v14, %v74_v13  ;;  %v296_v22 = vrot.slane %v291_v19, %v295_v18  ;;  %v300_v23 = vrot.slane %v291_v19, %v299_v20  ;;  %v304_v25 = vrot.slane %v291_v19, %v303_v21  ;;  %s337_s13 = sshll.u32 %s467_s2, 4  ;;  %s338_s13 = int_to_ptr.vmem [resolvable:$true] %s337_s13 }
  0x3a   :  { %367 = vmatpush3.bf16.msra.mxu1 %v137_v39  ;;  %s432_s14 = scalar_lea.vmem %s338_s13, 1536  ;;  %p437_p3 = scmp.lt.s32.totalorder %s338_s13, %s338_s13 }
  0x3b   :  { %159 = vmatpush1.bf16.msra.mxu0 %v138_v48  ;;  %368 = vmatprep.subr.bf16.mxu1 %v140_v50  ;;  %p433_p2 = scmp.ne.s32.totalorder %s338_s13, %s432_s14  ;;  %p438_p4 = scmp.lt.s32.totalorder %s432_s14, %s432_s14 }
  0x3c   :  { %160 = vmatprep.subr.bf16.mxu0 %v142_v52 }
  0x3d   :  { %p439_p5 = por %p438_p4, %p437_p3 }
  0x3e   :  { %369 = vmatpush3.bf16.msra.mxu1 %v140_v50 }
  0x3f   :  { %161 = vmatpush1.bf16.msra.mxu0 %v141_v58  ;;  %370 = vmatprep.subr.bf16.mxu1 %v143_v60  ;;  %p440_p6 = pnand %p439_p5, %p433_p2 }
  0x40   :  { %162 = vmatprep.subr.bf16.mxu0 %v145_v61 }
  0x42   :  { %371 = vmatpush3.bf16.msra.mxu1 %v143_v60 }
  0x43   :  { %163 = vmatpush1.bf16.msra.mxu0 %v144_v4  ;;  %372 = vmatprep.subr.bf16.mxu1 %v146_v6 }
  0x44   :  { %164 = vmatprep.subr.bf16.mxu0 %v148_v7 }
  0x46   :  { %373 = vmatpush3.bf16.msra.mxu1 %v146_v6 }
  0x47   :  { %165 = vmatpush1.bf16.msra.mxu0 %v147_v11  ;;  %374 = vmatprep.subr.bf16.mxu1 %v149_v12 }
  0x4a   :  { %183 = vmatmul.mubr.bf16.vlgmr.msra.gmra.mrb[0].mxu0 %v76_v51  ;;  %375 = vmatpush3.bf16.msra.mxu1 %v149_v12 }
  0x4b   :  { %192 = vmatprep.mubr.bf16.mxu0 %v466_v0 }
  0x4d   :  { %377 = vmatmul.mubr.bf16.vlgmr.msra.gmra.mrb[0].mxu1 %v77_v15 }
  0x52   :  { %193 = vmatmul.mubr.bf16.gmra.mrb[4].mxu0 %v77_v15 }
 0x11d   :  { %v184_v24 = vpop.f32.mrb[0].mxu0 }
 0x11e   :  { %v308_v26 = vadd.f32 %v296_v22, %v184_v24  ;;  %v186_v27 = vpop.f32.mrb[1].mxu0 }
 0x11f   :  { %v309_v28 = vadd.f32 %v300_v23, %v186_v27  ;;  %v188_v29 = vpop.f32.mrb[2].mxu0 }
 0x120   :  { %320 = vst [vmem:[#allocation8] sm:$0xff] %v308_v26  ;;  %v311_v0 = vadd.f32 %v296_v22, %v188_v29  ;;  %v190_v30 = vpop.f32.mrb[3].mxu0  ;;  %v378_v31 = vpop.f32.mrb[0].mxu1 }
 0x121   :  { %321 = vst [vmem:[#allocation8 + $0x8] sm:$0xff] %v309_v28  ;;  %v312_v32 = vadd.f32 %v300_v23, %v190_v30  ;;  %v316_v33 = vadd.f32 %v378_v31, %v304_v25  ;;  %v237_v34 = vpop.f32.mrb[1].mxu1 }
 0x122   :  { %323 = vst [vmem:[#allocation8 + $0x18] sm:$0xff] %v311_v0  ;;  %v310_v35 = vadd.f32 %v304_v25, %v237_v34  ;;  %v379_v36 = vpop.f32.mrb[2].mxu1 }
 0x123   :  { %324 = vst [vmem:[#allocation8 + $0x20] sm:$0xff] %v312_v32  ;;  %328 = vst [vmem:[#allocation8 + $0x40] sm:$0xff] %v316_v33  ;;  %v319_v37 = vadd.f32 %v379_v36, %v304_v25  ;;  %v240_v38 = vpop.f32.mrb[3].mxu1 }
 0x124   :  { %322 = vst [vmem:[#allocation8 + $0x10] sm:$0xff] %v310_v35  ;;  %v313_v39 = vadd.f32 %v304_v25, %v240_v38 }
 0x125   :  { %331 = vst [vmem:[#allocation8 + $0x58] sm:$0xff] %v319_v37  ;;  %v194_v40 = vpop.f32.mrb[4].mxu0 }
 0x126   :  { %v314_v41 = vadd.f32 %v296_v22, %v194_v40  ;;  %325 = vst [vmem:[#allocation8 + $0x28] sm:$0xff] %v313_v39  ;;  %v196_v42 = vpop.f32.mrb[5].mxu0 }
 0x127   :  { %v315_v43 = vadd.f32 %v300_v23, %v196_v42  ;;  %v198_v44 = vpop.f32.mrb[6].mxu0 }
 0x128   :  { %326 = vst [vmem:[#allocation8 + $0x30] sm:$0xff] %v314_v41  ;;  %v317_v45 = vadd.f32 %v296_v22, %v198_v44  ;;  %v200_v46 = vpop.f32.mrb[7].mxu0 }
 0x129   :  { %327 = vst [vmem:[#allocation8 + $0x38] sm:$0xff] %v315_v43  ;;  %v318_v47 = vadd.f32 %v300_v23, %v200_v46 }
 0x12a   :  { %329 = vst [vmem:[#allocation8 + $0x48] sm:$0xff] %v317_v45 }
 0x12b   :  { %330 = vst [vmem:[#allocation8 + $0x50] sm:$0xff] %v318_v47 }
 0x12c   :  { %443 = shalt.err (!%p440_p6)
}
 0x12d   :  { %s444_s17 = scalar_lea.hbm %s538_s3, 1536 }
 0x12e   :  { %p445_p7 = scmp.ne.s32.totalorder %s538_s3, %s444_s17  ;;  %p448_p8 = scmp.lt.u32.totalorder %s444_s17, %s538_s3 }
 0x130   :  { %p450_p9 = pnand %p448_p8, %p445_p7 }
 0x132   :  { %453 = shalt.err (!%p450_p9)
}
 0x133   :  { %343 = dma.vmem_to_hbm [thread:$0]  %s338_s13, 1536, %s538_s3, [#allocation5], %s464_s0, %s464_s0, %s465_s9  }
 0x134   :  { %458 = dma.done.wait [#allocation5], 1536  }
 0x135   :  { %459 = vsyncadd [#allocation5], 4294965760 }
 0x136   :  { %347 = vsyncpa [#allocation4], 1 }
 0x137   :  { %348 = vsyncpa [#allocation7], 1 }
 0x138   :  { %349 = vsyncpa [#allocation5], 1 }

</bundles_post_ra>
